<compile_context>
chip_gen: v5e
topology: v5e:2x2
jax: 0.10.0
libtpu: 0.0.40
codegen_flags: <defaults>
</compile_context>

<pallas_src>
import jax
import jax.numpy as jnp
from jax.experimental import pallas as pl
from jax.experimental.pallas import tpu as pltpu

# Small, shape-consistent sizes.
B = 2            # batch
S = 8            # encoder sequence length
H = 32           # hidden_size
E = 16           # embedding_size
V = 20           # output_size (vocab)
NUM_LAYERS = 1   # the reference Attention only type-checks with 1 LSTM layer

PH = jax.lax.Precision.HIGHEST

# ---- packed-slab row offsets (all slice starts are multiples of 8) ----------
# wbig slab: (WBIG_ROWS, 5H) lanes
ROW_BG    = E + H          # 48: fused LSTM gate bias row (b_ih + b_hh)
WH_ROW0   = 56             # [whh_t | wah_t] block start
WBIG_ROWS = WH_ROW0 + H    # 88
# w2 slab: (W2_ROWS, H) lanes
ROW_BA    = H              # 32: attention bias row
ROW_WS    = 40             # attention score-weight row
ROW_EMB   = 48             # embedding table rows 48:48+V (lanes 0:E)
ROW_WOUT  = 72             # out_w^T rows 72:72+H (lanes 0:V)
ROW_BOUT  = ROW_WOUT + H   # 104: out bias row
W2_ROWS   = ROW_BOUT + 1   # 105


# --------------------------------------------------------------------------
# Fused kernel: attention -> context -> embedding gather -> LSTM cell ->
# output projection -> log_softmax.  Single invocation, everything in VMEM.
# --------------------------------------------------------------------------
def _attn_decoder_kernel(ids_ref, h_ref, c_ref, enc_ref, wbig_ref, w2_ref,
                         logp_ref, hnew_ref, cnew_ref, attn_ref,
                         pmat_ref, gin_ref):
    f32 = jnp.float32
    h = h_ref[0]                                     # (B, H) decoder hidden
    c = c_ref[0]                                     # (B, H) decoder cell
    enc = enc_ref[...]                               # (B*S, H), row b*S + s

    # ---------------- fused hidden-state matmul --------------------------
    # One dot produces BOTH the LSTM hidden gate contribution (h @ whh^T) and
    # the attention hidden part (h @ wah^T): hw = h @ [whh_t | wah_t].
    whh_wah = wbig_ref[WH_ROW0:WH_ROW0 + H, :]       # (H, 5H)
    hw = jnp.dot(h, whh_wah, preferred_element_type=f32, precision=PH)  # (B,5H)
    gates_h = hw[:, :4 * H]                          # (B, 4H), lane-aligned
    hid_part = hw[:, 4 * H:]                         # (B, H),  lane-aligned

    # ---------------- attention ------------------------------------------
    wae_t = w2_ref[0:H, :]                           # (H, H)
    ba = w2_ref[ROW_BA:ROW_BA + 1, :]                # (1, H)
    ws = w2_ref[ROW_WS:ROW_WS + 1, :]                # (1, H)

    enc_part = jnp.dot(enc, wae_t, preferred_element_type=f32,
                       precision=PH)                 # (B*S, H)

    # energy[b*S+s,:] = tanh(Wae enc[b,s] + Wah h[b] + ba), built per-batch
    # (B=2, unrolled) then stacked on the sublane axis (8-row aligned).
    energy_parts = []
    for b in range(B):
        energy_parts.append(jnp.tanh(enc_part[b * S:(b + 1) * S, :]
                                     + hid_part[b:b + 1, :] + ba))
    energy = jnp.concatenate(energy_parts, axis=0)   # (B*S, H)

    # Batched score dot: (1, H) x (B*S, H)^T -> lane-dense (1, B*S).
    scores = jax.lax.dot_general(ws, energy, (((1,), (1,)), ((), ())),
                                 preferred_element_type=f32, precision=PH)

    # Per-segment softmax; probabilities also written into a zeroed
    # block-diagonal (B, B*S) scratch so context is ONE matmul.
    pmat_ref[...] = jnp.zeros((B, B * S), f32)
    for b in range(B):
        sb = scores[:, b * S:(b + 1) * S]                         # (1, S)
        m = jnp.max(sb, axis=1, keepdims=True)
        e = jnp.exp(sb - m)
        p = e / jnp.sum(e, axis=1, keepdims=True)                 # (1, S)
        attn_ref[b:b + 1, :] = p
        pmat_ref[b:b + 1, b * S:(b + 1) * S] = p

    ctx = jnp.dot(pmat_ref[...], enc, preferred_element_type=f32,
                  precision=PH)                                   # (B, H)

    # ---------------- embedding gather + LSTM input concat ----------------
    # Direct dynamic row loads from the packed slab (ids come from SMEM);
    # relu(cat(emb, ctx)) is assembled in a small VMEM scratch so the LSTM
    # input projection is ONE K=E+H dot.
    for b in range(B):
        row = w2_ref[pl.ds(ROW_EMB + ids_ref[b], 1), :]           # (1, H)
        gin_ref[b:b + 1, 0:E] = jnp.maximum(row[:, 0:E], 0.0)
    gin_ref[:, E:E + H] = jnp.maximum(ctx, 0.0)
    # TODO(synk): embedding_dropout is identity (eval mode).

    # ---------------- LSTM cell -------------------------------------------
    wih_t = wbig_ref[0:E + H, 0:4 * H]                            # (E+H, 4H)
    bg = wbig_ref[ROW_BG:ROW_BG + 1, 0:4 * H]                     # (1, 4H)
    gates = (jnp.dot(gin_ref[...], wih_t, preferred_element_type=f32,
                     precision=PH)
             + gates_h + bg)                          # (B, 4H), order i,f,g,o
    i_g = jax.nn.sigmoid(gates[:, 0 * H:1 * H])
    f_g = jax.nn.sigmoid(gates[:, 1 * H:2 * H])
    g_g = jnp.tanh(gates[:, 2 * H:3 * H])
    o_g = jax.nn.sigmoid(gates[:, 3 * H:4 * H])

    c_new = f_g * c + i_g * g_g
    h_new = o_g * jnp.tanh(c_new)
    cnew_ref[0] = c_new
    hnew_ref[0] = h_new

    # ---------------- output projection + log_softmax ---------------------
    wout = w2_ref[ROW_WOUT:ROW_WOUT + H, :]           # (H, H); cols V: are 0
    bout = w2_ref[ROW_BOUT:ROW_BOUT + 1, :]           # (1, H); cols V: are 0
    logits = (jnp.dot(h_new, wout, preferred_element_type=f32, precision=PH)
              + bout)[:, 0:V]                                     # (B, V)
    lm = jnp.max(logits, axis=1, keepdims=True)
    lse = lm + jnp.log(jnp.sum(jnp.exp(logits - lm), axis=1, keepdims=True))
    logp_ref[...] = logits - lse


# --------------------------------------------------------------------------
# One-time parameter preparation (outside the jitted hot path): transposes,
# bias fusion, and packing into two slice-aligned VMEM slabs (6 DMAs total
# per call instead of 15).
# --------------------------------------------------------------------------
def prepare_params(params):
    f32 = jnp.float32
    wa = params["att_w"]                              # (H, 2H)
    wah_t = wa[:, :H].T                               # (H, H)  acts on hidden
    wae_t = wa[:, H:].T                               # (H, H)  acts on encoder
    whh_t = params["lstm_w_hh"].T                     # (H, 4H)
    wih_t = params["lstm_w_ih"].T                     # (E+H, 4H)
    b_gates = params["lstm_b_ih"] + params["lstm_b_hh"]   # (4H,)
    wout_t = params["out_w"].T                        # (H, V)

    wbig = jnp.zeros((WBIG_ROWS, 5 * H), f32)
    wbig = wbig.at[0:E + H, 0:4 * H].set(wih_t)
    wbig = wbig.at[ROW_BG, 0:4 * H].set(b_gates)
    wbig = wbig.at[WH_ROW0:WH_ROW0 + H, :].set(
        jnp.concatenate([whh_t, wah_t], axis=1))

    w2 = jnp.zeros((W2_ROWS, H), f32)
    w2 = w2.at[0:H, :].set(wae_t)
    w2 = w2.at[ROW_BA, :].set(params["att_b"])
    w2 = w2.at[ROW_WS, :].set(params["score_w"][0])
    w2 = w2.at[ROW_EMB:ROW_EMB + V, 0:E].set(params["embedding"])
    w2 = w2.at[ROW_WOUT:ROW_WOUT + H, 0:V].set(wout_t)
    w2 = w2.at[ROW_BOUT, 0:V].set(params["out_b"])
    return {"wbig": wbig, "w2": w2}


# --------------------------------------------------------------------------
# Forward pass: one pallas_call, minimal wrapper plumbing.
# --------------------------------------------------------------------------
@jax.jit
def attn_decoder_forward(prep, inputs, hidden, encoder_outputs):
    h, c = hidden                                     # each (1, B, H)
    ids = inputs.astype(jnp.int32)                    # (B,) token ids -> SMEM
    # Batch-major flatten: row b*S + s == encoder_outputs[s, b, :].  One tiny
    # (2 KiB) wrapper copy keeps every in-kernel slice tile-aligned.
    enc2d = jnp.transpose(encoder_outputs, (1, 0, 2)).reshape(B * S, H)

    smem = pl.BlockSpec(memory_space=pltpu.MemorySpace.SMEM)
    vmem = pl.BlockSpec(memory_space=pltpu.MemorySpace.VMEM)
    logp, h_new, c_new, attn = pl.pallas_call(
        _attn_decoder_kernel,
        out_shape=(jax.ShapeDtypeStruct((B, V), jnp.float32),
                   jax.ShapeDtypeStruct((NUM_LAYERS, B, H), jnp.float32),
                   jax.ShapeDtypeStruct((NUM_LAYERS, B, H), jnp.float32),
                   jax.ShapeDtypeStruct((B, S), jnp.float32)),
        in_specs=[smem, vmem, vmem, vmem, vmem, vmem],
        out_specs=(vmem, vmem, vmem, vmem),
        scratch_shapes=[pltpu.VMEM((B, B * S), jnp.float32),   # block-diag attn
                        pltpu.VMEM((B, E + H), jnp.float32)],  # LSTM input cat
    )(ids, h, c, enc2d, prep["wbig"], prep["w2"])
    return logp, (h_new, c_new), attn


# --------------------------------------------------------------------------
# Pure-JAX reference (mirrors the PyTorch forward exactly) for verification.
# --------------------------------------------------------------------------
def reference_forward(params, inputs, hidden, enc):
    h, c = hidden
    emb = params["embedding"][inputs]                              # (B, E)
    h_rep = jnp.broadcast_to(h[0][None], (S, B, H))                # repeat(S,1,1)
    cat = jnp.concatenate([h_rep, enc], axis=2)                    # (S, B, 2H)
    energy = jnp.tanh(jnp.einsum("sbk,hk->sbh", cat, params["att_w"],
                                 precision=PH) + params["att_b"])
    scores = jnp.einsum("sbh,h->sb", energy, params["score_w"][0],
                        precision=PH).T                            # (B, S)
    attn = jax.nn.softmax(scores, axis=1)
    ctx = jnp.einsum("bs,sbh->bh", attn, enc, precision=PH)        # (B, H)
    x = jax.nn.relu(jnp.concatenate([emb, ctx], axis=1))           # (B, E+H)
    gates = (jnp.dot(x, params["lstm_w_ih"].T, precision=PH)
             + jnp.dot(h[0], params["lstm_w_hh"].T, precision=PH)
             + params["lstm_b_ih"] + params["lstm_b_hh"])
    i, f, g, o = jnp.split(gates, 4, axis=1)
    i, f, o = jax.nn.sigmoid(i), jax.nn.sigmoid(f), jax.nn.sigmoid(o)
    g = jnp.tanh(g)
    c_new = f * c[0] + i * g
    h_new = o * jnp.tanh(c_new)
    logits = jnp.dot(h_new, params["out_w"].T, precision=PH) + params["out_b"]
    logp = jax.nn.log_softmax(logits, axis=1)
    return logp, (h_new[None], c_new[None]), attn


def init_params(key):
    ks = jax.random.split(key, 10)

    def uni(k, shape, fan_in):
        bound = 1.0 / (fan_in ** 0.5)
        return jax.random.uniform(k, shape, jnp.float32, -bound, bound)

    return {
        "embedding": jax.random.normal(ks[0], (V, E), jnp.float32),
        "att_w": uni(ks[1], (H, 2 * H), 2 * H),
        "att_b": uni(ks[2], (H,), 2 * H),
        "score_w": uni(ks[3], (1, H), H),
        "lstm_w_ih": uni(ks[4], (4 * H, E + H), H),
        "lstm_w_hh": uni(ks[5], (4 * H, H), H),
        "lstm_b_ih": uni(ks[6], (4 * H,), H),
        "lstm_b_hh": uni(ks[7], (4 * H,), H),
        "out_w": uni(ks[8], (V, H), H),
        "out_b": uni(ks[9], (V,), H),
    }


if __name__ == "__main__":
    key = jax.random.PRNGKey(0)
    pkey, ikey, ekey, hkey, ckey = jax.random.split(key, 5)

    params = init_params(pkey)
    inputs = jax.random.randint(ikey, (B,), 0, V)                     # token ids
    encoder_outputs = jax.random.normal(ekey, (S, B, H), jnp.float32)
    h0 = jax.random.normal(hkey, (NUM_LAYERS, B, H), jnp.float32)
    c0 = jax.random.normal(ckey, (NUM_LAYERS, B, H), jnp.float32)

    prep = prepare_params(params)   # one-time weight packing (not in hot path)

    logp, (h1, c1), attn = attn_decoder_forward(
        prep, inputs, (h0, c0), encoder_outputs)
    jax.block_until_ready((logp, h1, c1, attn))

    # Sanity check against the pure-JAX reference (original param layout).
    r_logp, (r_h1, r_c1), r_attn = reference_forward(
        params, inputs, (h0, c0), encoder_outputs)
    assert logp.shape == (B, V) and attn.shape == (B, S)
    assert h1.shape == (NUM_LAYERS, B, H) and c1.shape == (NUM_LAYERS, B, H)
    assert jnp.allclose(attn, r_attn, atol=1e-4, rtol=1e-4)
    assert jnp.allclose(logp, r_logp, atol=1e-4, rtol=1e-4)
    assert jnp.allclose(h1, r_h1, atol=1e-4, rtol=1e-4)
    assert jnp.allclose(c1, r_c1, atol=1e-4, rtol=1e-4)

    print("KERNEL_OK")
</pallas_src>

<mosaic_0001>
module attributes {stable_mosaic.version = 11 : i64} {
  func.func @_attn_decoder_kernel(%arg0: memref<2xi32, #tpu.memory_space<smem>>, %arg1: memref<1x2x32xf32, #tpu.memory_space<vmem>>, %arg2: memref<1x2x32xf32, #tpu.memory_space<vmem>>, %arg3: memref<16x32xf32, #tpu.memory_space<vmem>>, %arg4: memref<88x160xf32, #tpu.memory_space<vmem>>, %arg5: memref<105x32xf32, #tpu.memory_space<vmem>>, %arg6: memref<2x20xf32, #tpu.memory_space<vmem>>, %arg7: memref<1x2x32xf32, #tpu.memory_space<vmem>>, %arg8: memref<1x2x32xf32, #tpu.memory_space<vmem>>, %arg9: memref<2x8xf32, #tpu.memory_space<vmem>>, %arg10: memref<2x16xf32, #tpu.memory_space<vmem>>, %arg11: memref<2x48xf32, #tpu.memory_space<vmem>>) attributes {dimension_semantics = [], scalar_prefetch = 0 : i64, scratch_operands = 2 : i64, tpu.core_type = #tpu.core_type<tc>} {
    %c0 = arith.constant 0 : index
    %c0_0 = arith.constant 0 : index
    %c0_1 = arith.constant 0 : index
    %0 = vector.load %arg1[%c0, %c0_0, %c0_1] : memref<1x2x32xf32, #tpu.memory_space<vmem>>, vector<1x2x32xf32>
    %1 = vector.shape_cast %0 : vector<1x2x32xf32> to vector<2x32xf32>
    %c0_2 = arith.constant 0 : index
    %c0_3 = arith.constant 0 : index
    %c0_4 = arith.constant 0 : index
    %2 = vector.load %arg2[%c0_2, %c0_3, %c0_4] : memref<1x2x32xf32, #tpu.memory_space<vmem>>, vector<1x2x32xf32>
    %3 = vector.shape_cast %2 : vector<1x2x32xf32> to vector<2x32xf32>
    %c0_5 = arith.constant 0 : index
    %c0_6 = arith.constant 0 : index
    %4 = vector.load %arg3[%c0_5, %c0_6] : memref<16x32xf32, #tpu.memory_space<vmem>>, vector<16x32xf32>
    %c56 = arith.constant 56 : index
    %c0_7 = arith.constant 0 : index
    %5 = vector.load %arg4[%c56, %c0_7] : memref<88x160xf32, #tpu.memory_space<vmem>>, vector<32x160xf32>
    %cst = arith.constant dense<0.000000e+00> : vector<2x160xf32>
    %6 = tpu.matmul %1, %5, %cst {dimension_numbers = #tpu.dot_dimension_numbers<[1], [0], [0], [1], [0, 0, 1, 1], [], []>, precision = #tpu.contract_precision<fp32>} : vector<2x32xf32>, vector<32x160xf32>, vector<2x160xf32> -> vector<2x160xf32>
    %7 = vector.extract_strided_slice %6 {offsets = [0, 0], sizes = [2, 128], strides = [1, 1]} : vector<2x160xf32> to vector<2x128xf32>
    %8 = vector.extract_strided_slice %6 {offsets = [0, 128], sizes = [2, 32], strides = [1, 1]} : vector<2x160xf32> to vector<2x32xf32>
    %c0_8 = arith.constant 0 : index
    %c0_9 = arith.constant 0 : index
    %9 = vector.load %arg5[%c0_8, %c0_9] : memref<105x32xf32, #tpu.memory_space<vmem>>, vector<32x32xf32>
    %c32 = arith.constant 32 : index
    %c0_10 = arith.constant 0 : index
    %10 = vector.load %arg5[%c32, %c0_10] : memref<105x32xf32, #tpu.memory_space<vmem>>, vector<1x32xf32>
    %c40 = arith.constant 40 : index
    %c0_11 = arith.constant 0 : index
    %11 = vector.load %arg5[%c40, %c0_11] : memref<105x32xf32, #tpu.memory_space<vmem>>, vector<1x32xf32>
    %cst_12 = arith.constant dense<0.000000e+00> : vector<16x32xf32>
    %12 = tpu.matmul %4, %9, %cst_12 {dimension_numbers = #tpu.dot_dimension_numbers<[1], [0], [0], [1], [0, 0, 1, 1], [], []>, precision = #tpu.contract_precision<fp32>} : vector<16x32xf32>, vector<32x32xf32>, vector<16x32xf32> -> vector<16x32xf32>
    %13 = vector.extract_strided_slice %12 {offsets = [0, 0], sizes = [8, 32], strides = [1, 1]} : vector<16x32xf32> to vector<8x32xf32>
    %14 = vector.extract_strided_slice %8 {offsets = [0, 0], sizes = [1, 32], strides = [1, 1]} : vector<2x32xf32> to vector<1x32xf32>
    %15 = vector.broadcast %14 : vector<1x32xf32> to vector<8x32xf32>
    %16 = arith.addf %13, %15 : vector<8x32xf32>
    %17 = vector.broadcast %10 : vector<1x32xf32> to vector<8x32xf32>
    %18 = arith.addf %16, %17 : vector<8x32xf32>
    %19 = math.tanh %18 : vector<8x32xf32>
    %20 = vector.extract_strided_slice %12 {offsets = [8, 0], sizes = [8, 32], strides = [1, 1]} : vector<16x32xf32> to vector<8x32xf32>
    %21 = vector.extract_strided_slice %8 {offsets = [1, 0], sizes = [1, 32], strides = [1, 1]} : vector<2x32xf32> to vector<1x32xf32>
    %22 = vector.broadcast %21 : vector<1x32xf32> to vector<8x32xf32>
    %23 = arith.addf %20, %22 : vector<8x32xf32>
    %24 = vector.broadcast %10 : vector<1x32xf32> to vector<8x32xf32>
    %25 = arith.addf %23, %24 : vector<8x32xf32>
    %26 = math.tanh %25 : vector<8x32xf32>
    %27 = tpu.concatenate %19, %26 in 0 : vector<8x32xf32>, vector<8x32xf32> -> vector<16x32xf32>
    %cst_13 = arith.constant dense<0.000000e+00> : vector<1x16xf32>
    %28 = tpu.matmul %11, %27, %cst_13 {dimension_numbers = #tpu.dot_dimension_numbers<[1], [1], [0], [0], [0, 0, 1, 0], [], []>, precision = #tpu.contract_precision<fp32>} : vector<1x32xf32>, vector<16x32xf32>, vector<1x16xf32> -> vector<1x16xf32>
    %cst_14 = arith.constant 0.000000e+00 : f32
    %29 = vector.broadcast %cst_14 : f32 to vector<2x16xf32>
    %c0_15 = arith.constant 0 : index
    %c0_16 = arith.constant 0 : index
    %30 = vector.load %arg10[%c0_15, %c0_16] : memref<2x16xf32, #tpu.memory_space<vmem>>, vector<2x16xf32>
    tpu.vector_store %arg10[%c0_15, %c0_16], %29 {strides = array<i32>} : memref<2x16xf32, #tpu.memory_space<vmem>>, vector<2x16xf32>,
    %31 = vector.extract_strided_slice %28 {offsets = [0, 0], sizes = [1, 8], strides = [1, 1]} : vector<1x16xf32> to vector<1x8xf32>
    %cst_17 = arith.constant dense<0xFF800000> : vector<1xf32>
    %32 = vector.multi_reduction <maximumf>, %31, %cst_17 [1] : vector<1x8xf32> to vector<1xf32>
    %33 = vector.shape_cast %32 : vector<1xf32> to vector<1x1xf32>
    %34 = vector.broadcast %33 : vector<1x1xf32> to vector<1x8xf32>
    %35 = arith.subf %31, %34 : vector<1x8xf32>
    %36 = math.exp %35 : vector<1x8xf32>
    %cst_18 = arith.constant dense<0.000000e+00> : vector<1xf32>
    %37 = vector.multi_reduction <add>, %36, %cst_18 [1] : vector<1x8xf32> to vector<1xf32>
    %38 = vector.shape_cast %37 : vector<1xf32> to vector<1x1xf32>
    %39 = vector.broadcast %38 : vector<1x1xf32> to vector<1x8xf32>
    %40 = arith.divf %36, %39 : vector<1x8xf32>
    %c0_19 = arith.constant 0 : index
    %c0_20 = arith.constant 0 : index
    %41 = vector.load %arg9[%c0_19, %c0_20] : memref<2x8xf32, #tpu.memory_space<vmem>>, vector<1x8xf32>
    tpu.vector_store %arg9[%c0_19, %c0_20], %40 {strides = array<i32>} : memref<2x8xf32, #tpu.memory_space<vmem>>, vector<1x8xf32>,
    %c0_21 = arith.constant 0 : index
    %c0_22 = arith.constant 0 : index
    %42 = vector.load %arg10[%c0_21, %c0_22] : memref<2x16xf32, #tpu.memory_space<vmem>>, vector<1x8xf32>
    tpu.vector_store %arg10[%c0_21, %c0_22], %40 {strides = array<i32>} : memref<2x16xf32, #tpu.memory_space<vmem>>, vector<1x8xf32>,
    %43 = vector.extract_strided_slice %28 {offsets = [0, 8], sizes = [1, 8], strides = [1, 1]} : vector<1x16xf32> to vector<1x8xf32>
    %cst_23 = arith.constant dense<0xFF800000> : vector<1xf32>
    %44 = vector.multi_reduction <maximumf>, %43, %cst_23 [1] : vector<1x8xf32> to vector<1xf32>
    %45 = vector.shape_cast %44 : vector<1xf32> to vector<1x1xf32>
    %46 = vector.broadcast %45 : vector<1x1xf32> to vector<1x8xf32>
    %47 = arith.subf %43, %46 : vector<1x8xf32>
    %48 = math.exp %47 : vector<1x8xf32>
    %cst_24 = arith.constant dense<0.000000e+00> : vector<1xf32>
    %49 = vector.multi_reduction <add>, %48, %cst_24 [1] : vector<1x8xf32> to vector<1xf32>
    %50 = vector.shape_cast %49 : vector<1xf32> to vector<1x1xf32>
    %51 = vector.broadcast %50 : vector<1x1xf32> to vector<1x8xf32>
    %52 = arith.divf %48, %51 : vector<1x8xf32>
    %c1 = arith.constant 1 : index
    %c0_25 = arith.constant 0 : index
    %53 = vector.load %arg9[%c1, %c0_25] : memref<2x8xf32, #tpu.memory_space<vmem>>, vector<1x8xf32>
    tpu.vector_store %arg9[%c1, %c0_25], %52 {strides = array<i32>} : memref<2x8xf32, #tpu.memory_space<vmem>>, vector<1x8xf32>,
    %c1_26 = arith.constant 1 : index
    %c8 = arith.constant 8 : index
    %54 = vector.load %arg10[%c1_26, %c8] : memref<2x16xf32, #tpu.memory_space<vmem>>, vector<1x8xf32>
    tpu.vector_store %arg10[%c1_26, %c8], %52 {strides = array<i32>} : memref<2x16xf32, #tpu.memory_space<vmem>>, vector<1x8xf32>,
    %c0_27 = arith.constant 0 : index
    %c0_28 = arith.constant 0 : index
    %55 = vector.load %arg10[%c0_27, %c0_28] : memref<2x16xf32, #tpu.memory_space<vmem>>, vector<2x16xf32>
    %cst_29 = arith.constant dense<0.000000e+00> : vector<2x32xf32>
    %56 = tpu.matmul %55, %4, %cst_29 {dimension_numbers = #tpu.dot_dimension_numbers<[1], [0], [0], [1], [0, 0, 1, 1], [], []>, precision = #tpu.contract_precision<fp32>} : vector<2x16xf32>, vector<16x32xf32>, vector<2x32xf32> -> vector<2x32xf32>
    %c0_30 = arith.constant 0 : index
    %57 = memref.load %arg0[%c0_30] : memref<2xi32, #tpu.memory_space<smem>>
    %c48_i32 = arith.constant 48 : i32
    %58 = arith.addi %c48_i32, %57 : i32
    %59 = arith.index_cast %58 : i32 to index
    %c0_31 = arith.constant 0 : index
    %60 = vector.load %arg5[%59, %c0_31] : memref<105x32xf32, #tpu.memory_space<vmem>>, vector<1x32xf32>
    %61 = vector.extract_strided_slice %60 {offsets = [0, 0], sizes = [1, 16], strides = [1, 1]} : vector<1x32xf32> to vector<1x16xf32>
    %cst_32 = arith.constant 0.000000e+00 : f32
    %62 = vector.broadcast %cst_32 : f32 to vector<1x16xf32>
    %63 = arith.maximumf %61, %62 : vector<1x16xf32>
    %c0_33 = arith.constant 0 : index
    %c0_34 = arith.constant 0 : index
    %64 = vector.load %arg11[%c0_33, %c0_34] : memref<2x48xf32, #tpu.memory_space<vmem>>, vector<1x16xf32>
    tpu.vector_store %arg11[%c0_33, %c0_34], %63 {strides = array<i32>} : memref<2x48xf32, #tpu.memory_space<vmem>>, vector<1x16xf32>,
    %c1_35 = arith.constant 1 : index
    %65 = memref.load %arg0[%c1_35] : memref<2xi32, #tpu.memory_space<smem>>
    %c48_i32_36 = arith.constant 48 : i32
    %66 = arith.addi %c48_i32_36, %65 : i32
    %67 = arith.index_cast %66 : i32 to index
    %c0_37 = arith.constant 0 : index
    %68 = vector.load %arg5[%67, %c0_37] : memref<105x32xf32, #tpu.memory_space<vmem>>, vector<1x32xf32>
    %69 = vector.extract_strided_slice %68 {offsets = [0, 0], sizes = [1, 16], strides = [1, 1]} : vector<1x32xf32> to vector<1x16xf32>
    %cst_38 = arith.constant 0.000000e+00 : f32
    %70 = vector.broadcast %cst_38 : f32 to vector<1x16xf32>
    %71 = arith.maximumf %69, %70 : vector<1x16xf32>
    %c1_39 = arith.constant 1 : index
    %c0_40 = arith.constant 0 : index
    %72 = vector.load %arg11[%c1_39, %c0_40] : memref<2x48xf32, #tpu.memory_space<vmem>>, vector<1x16xf32>
    tpu.vector_store %arg11[%c1_39, %c0_40], %71 {strides = array<i32>} : memref<2x48xf32, #tpu.memory_space<vmem>>, vector<1x16xf32>,
    %cst_41 = arith.constant 0.000000e+00 : f32
    %73 = vector.broadcast %cst_41 : f32 to vector<2x32xf32>
    %74 = arith.maximumf %56, %73 : vector<2x32xf32>
    %c0_42 = arith.constant 0 : index
    %c16 = arith.constant 16 : index
    %75 = vector.load %arg11[%c0_42, %c16] : memref<2x48xf32, #tpu.memory_space<vmem>>, vector<2x32xf32>
    tpu.vector_store %arg11[%c0_42, %c16], %74 {strides = array<i32>} : memref<2x48xf32, #tpu.memory_space<vmem>>, vector<2x32xf32>,
    %c0_43 = arith.constant 0 : index
    %c0_44 = arith.constant 0 : index
    %76 = vector.load %arg4[%c0_43, %c0_44] : memref<88x160xf32, #tpu.memory_space<vmem>>, vector<48x128xf32>
    %c48 = arith.constant 48 : index
    %c0_45 = arith.constant 0 : index
    %77 = vector.load %arg4[%c48, %c0_45] : memref<88x160xf32, #tpu.memory_space<vmem>>, vector<1x128xf32>
    %c0_46 = arith.constant 0 : index
    %c0_47 = arith.constant 0 : index
    %78 = vector.load %arg11[%c0_46, %c0_47] : memref<2x48xf32, #tpu.memory_space<vmem>>, vector<2x48xf32>
    %cst_48 = arith.constant dense<0.000000e+00> : vector<2x128xf32>
    %79 = tpu.matmul %78, %76, %cst_48 {dimension_numbers = #tpu.dot_dimension_numbers<[1], [0], [0], [1], [0, 0, 1, 1], [], []>, precision = #tpu.contract_precision<fp32>} : vector<2x48xf32>, vector<48x128xf32>, vector<2x128xf32> -> vector<2x128xf32>
    %80 = arith.addf %79, %7 : vector<2x128xf32>
    %81 = vector.broadcast %77 : vector<1x128xf32> to vector<2x128xf32>
    %82 = arith.addf %80, %81 : vector<2x128xf32>
    %83 = vector.extract_strided_slice %82 {offsets = [0, 0], sizes = [2, 32], strides = [1, 1]} : vector<2x128xf32> to vector<2x32xf32>
    %84 = arith.negf %83 : vector<2x32xf32>
    %85 = math.exp %84 : vector<2x32xf32>
    %cst_49 = arith.constant 1.000000e+00 : f32
    %86 = vector.broadcast %cst_49 : f32 to vector<2x32xf32>
    %87 = arith.addf %86, %85 : vector<2x32xf32>
    %88 = arith.divf %86, %87 : vector<2x32xf32>
    %89 = vector.extract_strided_slice %82 {offsets = [0, 32], sizes = [2, 32], strides = [1, 1]} : vector<2x128xf32> to vector<2x32xf32>
    %90 = arith.negf %89 : vector<2x32xf32>
    %91 = math.exp %90 : vector<2x32xf32>
    %cst_50 = arith.constant 1.000000e+00 : f32
    %92 = vector.broadcast %cst_50 : f32 to vector<2x32xf32>
    %93 = arith.addf %92, %91 : vector<2x32xf32>
    %94 = arith.divf %92, %93 : vector<2x32xf32>
    %95 = vector.extract_strided_slice %82 {offsets = [0, 64], sizes = [2, 32], strides = [1, 1]} : vector<2x128xf32> to vector<2x32xf32>
    %96 = math.tanh %95 : vector<2x32xf32>
    %97 = vector.extract_strided_slice %82 {offsets = [0, 96], sizes = [2, 32], strides = [1, 1]} : vector<2x128xf32> to vector<2x32xf32>
    %98 = arith.negf %97 : vector<2x32xf32>
    %99 = math.exp %98 : vector<2x32xf32>
    %cst_51 = arith.constant 1.000000e+00 : f32
    %100 = vector.broadcast %cst_51 : f32 to vector<2x32xf32>
    %101 = arith.addf %100, %99 : vector<2x32xf32>
    %102 = arith.divf %100, %101 : vector<2x32xf32>
    %103 = arith.mulf %94, %3 : vector<2x32xf32>
    %104 = arith.mulf %88, %96 : vector<2x32xf32>
    %105 = arith.addf %103, %104 : vector<2x32xf32>
    %106 = math.tanh %105 : vector<2x32xf32>
    %107 = arith.mulf %102, %106 : vector<2x32xf32>
    %c0_52 = arith.constant 0 : index
    %c0_53 = arith.constant 0 : index
    %c0_54 = arith.constant 0 : index
    %108 = vector.load %arg8[%c0_52, %c0_53, %c0_54] : memref<1x2x32xf32, #tpu.memory_space<vmem>>, vector<1x2x32xf32>
    %109 = vector.shape_cast %108 : vector<1x2x32xf32> to vector<2x32xf32>
    %110 = vector.shape_cast %105 : vector<2x32xf32> to vector<1x2x32xf32>
    tpu.vector_store %arg8[%c0_52, %c0_53, %c0_54], %110 {strides = array<i32>} : memref<1x2x32xf32, #tpu.memory_space<vmem>>, vector<1x2x32xf32>,
    %c0_55 = arith.constant 0 : index
    %c0_56 = arith.constant 0 : index
    %c0_57 = arith.constant 0 : index
    %111 = vector.load %arg7[%c0_55, %c0_56, %c0_57] : memref<1x2x32xf32, #tpu.memory_space<vmem>>, vector<1x2x32xf32>
    %112 = vector.shape_cast %111 : vector<1x2x32xf32> to vector<2x32xf32>
    %113 = vector.shape_cast %107 : vector<2x32xf32> to vector<1x2x32xf32>
    tpu.vector_store %arg7[%c0_55, %c0_56, %c0_57], %113 {strides = array<i32>} : memref<1x2x32xf32, #tpu.memory_space<vmem>>, vector<1x2x32xf32>,
    %c72 = arith.constant 72 : index
    %c0_58 = arith.constant 0 : index
    %114 = vector.load %arg5[%c72, %c0_58] : memref<105x32xf32, #tpu.memory_space<vmem>>, vector<32x32xf32>
    %c104 = arith.constant 104 : index
    %c0_59 = arith.constant 0 : index
    %115 = vector.load %arg5[%c104, %c0_59] : memref<105x32xf32, #tpu.memory_space<vmem>>, vector<1x32xf32>
    %cst_60 = arith.constant dense<0.000000e+00> : vector<2x32xf32>
    %116 = tpu.matmul %107, %114, %cst_60 {dimension_numbers = #tpu.dot_dimension_numbers<[1], [0], [0], [1], [0, 0, 1, 1], [], []>, precision = #tpu.contract_precision<fp32>} : vector<2x32xf32>, vector<32x32xf32>, vector<2x32xf32> -> vector<2x32xf32>
    %117 = vector.broadcast %115 : vector<1x32xf32> to vector<2x32xf32>
    %118 = arith.addf %116, %117 : vector<2x32xf32>
    %119 = vector.extract_strided_slice %118 {offsets = [0, 0], sizes = [2, 20], strides = [1, 1]} : vector<2x32xf32> to vector<2x20xf32>
    %cst_61 = arith.constant dense<0xFF800000> : vector<2xf32>
    %120 = vector.multi_reduction <maximumf>, %119, %cst_61 [1] : vector<2x20xf32> to vector<2xf32>
    %121 = vector.shape_cast %120 : vector<2xf32> to vector<2x1xf32>
    %122 = vector.broadcast %121 : vector<2x1xf32> to vector<2x20xf32>
    %123 = arith.subf %119, %122 : vector<2x20xf32>
    %124 = math.exp %123 : vector<2x20xf32>
    %cst_62 = arith.constant dense<0.000000e+00> : vector<2xf32>
    %125 = vector.multi_reduction <add>, %124, %cst_62 [1] : vector<2x20xf32> to vector<2xf32>
    %126 = vector.shape_cast %125 : vector<2xf32> to vector<2x1xf32>
    %127 = math.log %126 : vector<2x1xf32>
    %128 = arith.addf %121, %127 : vector<2x1xf32>
    %129 = vector.broadcast %128 : vector<2x1xf32> to vector<2x20xf32>
    %130 = arith.subf %119, %129 : vector<2x20xf32>
    %c0_63 = arith.constant 0 : index
    %c0_64 = arith.constant 0 : index
    %131 = vector.load %arg6[%c0_63, %c0_64] : memref<2x20xf32, #tpu.memory_space<vmem>>, vector<2x20xf32>
    tpu.vector_store %arg6[%c0_63, %c0_64], %130 {strides = array<i32>} : memref<2x20xf32, #tpu.memory_space<vmem>>, vector<2x20xf32>,
    return
  }
}

</mosaic_0001>

<bundles_post_ra>
// kernel: attn_decoder_forward.1
= control target key start
LH: loop header
LB: loop body
LE: loop exit
PB: predicated region body
PF: predicated region fallthrough
CT: control target
= control target key end

     0   :  { %15 = vsyncpa [#allocation6], 0  ;;  %s2200_s0 = inlined_call_operand.vmem [shape: s32[2], index: 0, kind: input, shape index: {}]   ;;  %s2201_s1 = inlined_call_operand.vmem [shape: f32[1,2,32], index: 1, kind: input, shape index: {}]   ;;  %s2202_s2 = inlined_call_operand.vmem [shape: f32[1,2,32], index: 2, kind: input, shape index: {}]   ;;  %s2203_s3 = inlined_call_operand.vmem [shape: f32[16,32], index: 3, kind: input, shape index: {}]   ;;  %s2204_s4 = inlined_call_operand.vmem [shape: f32[88,160], index: 4, kind: input, shape index: {}]   ;;  %s2205_s5 = inlined_call_operand.vmem [shape: f32[105,32], index: 5, kind: input, shape index: {}]   ;;  %s2206_s6 = inlined_call_operand.hbm [shape: f32[2,20], index: 6, kind: output, shape index: {0}]   ;;  %s2207_s7 = inlined_call_operand.hbm [shape: f32[1,2,32], index: 7, kind: output, shape index: {1}]   ;;  %s2208_s8 = inlined_call_operand.hbm [shape: f32[1,2,32], index: 8, kind: output, shape index: {2}]   ;;  %s2209_s9 = inlined_call_operand.hbm [shape: f32[2,8], index: 9, kind: output, shape index: {3}]  }
   0x1   :  { %16 = vsyncpa [#allocation5], 0 }
   0x2   :  { %17 = vsyncpa [#allocation9], 0 }
   0x3   :  { %18 = vsyncpa [#allocation12], 0  ;;  %s24_s11 = sshll.u32 %s2200_s0, 4  ;;  %s1791_s12 = smov [#allocation4]   ;;  %s25_s11 = int_to_ptr.vmem [resolvable:$true] %s24_s11 }
   0x4   :  { %27 = dma.vmem_to_smem %s25_s11, 16, %s1791_s12, [#allocation6]  }
   0x5   :  { %1783 = dma.done.wait [#allocation6], 16  }
   0x6   :  { %1784 = vsyncadd [#allocation6], 4294967280 }
   0x7   :  { %42 = sfence }
   0x8   :  { %v53_v0 = vld [vmem:[%s2204_s4 + $0xa0] sm:$0xff]  ;;  %v51_v1 = vld [vmem:[%s2204_s4 + $0x90] sm:$0xff]  ;;  %vm55_vm0 = vcmask 261120   ;;  %v54_v10 = vld [vmem:[%s2204_s4 + $0xa8] sm:$0xff]  ;;  %vm863_vm1 = vcmask 122944   ;;  %vm836_vm2 = vcmask 57344  }
   0x9   :  { %v49_v2 = vld [vmem:[%s2204_s4 + $0x80] sm:$0xff]  ;;  %v1864_v3 = vand.u32 4294901760, %v53_v0  ;;  %v1866_v4 = vand.u32 4294901760, %v51_v1  ;;  %v47_v6 = vld [vmem:[%s2204_s4 + $0x70] sm:$0xff]  ;;  %v52_v11 = vld [vmem:[%s2204_s4 + $0x98] sm:$0xff]  ;;  %v1899_v19 = vand.u32 4294901760, %v54_v10 }
   0xa   :  { %v1868_v5 = vand.u32 4294901760, %v49_v2  ;;  %v43_v7 = vld [vmem:[%s2201_s1] sm:$0x3]  ;;  %v1876_v8 = vand.u32 4294901760, %v47_v6  ;;  %v50_v12 = vld [vmem:[%s2204_s4 + $0x88] sm:$0xff]  ;;  %v48_v17 = vld [vmem:[%s2204_s4 + $0x78] sm:$0xff] }
   0xb   :  { %v57_v9 = vsel %vm55_vm0, %v43_v7, 0  ;;  %72 = vmatpush.msra.mxu0 %v1864_v3  ;;  %v101_v13 = vsub.f32 %v53_v0, %v1864_v3  ;;  %v107_v14 = vsub.f32 %v51_v1, %v1866_v4  ;;  %172 = vmatpush.msra.mxu3 %v1864_v3  ;;  %v1901_v20 = vand.u32 4294901760, %v52_v11  ;;  %v1952_v51 = vld [vmem:[%s2203_s3] sm:$0xff]  ;;  %v432_v53 = vld [vmem:[%s2205_s5 + $0x18] sm:$0xff]  ;;  %v431_v55 = vld [vmem:[%s2205_s5 + $0x10] sm:$0xff]  ;;  %s1792_s22 = smov 120  }
   0xc   :  { %v113_v15 = vsub.f32 %v49_v2, %v1868_v5  ;;  %v1893_v16 = vand.u32 4294901760, %v57_v9  ;;  %v119_v18 = vsub.f32 %v47_v6, %v1876_v8  ;;  %v1903_v21 = vand.u32 4294901760, %v50_v12  ;;  %v430_v59 = vld [vmem:[%s2205_s5 + $0x8] sm:$0xff]  ;;  %v429_v63 = vld [vmem:[%s2205_s5] sm:$0xff]  ;;  %s1062_s23 = sld [smem:[#allocation4]]  ;;  %s1794_s13 = smov 16  }
   0xd   :  { %74 = vmatpush.msra.mxu0 %v1866_v4  ;;  %143 = vmatpush.msra.mxu2 %v101_v13  ;;  %v102_v22 = vand.u32 4294901760, %v101_v13  ;;  %v108_v24 = vand.u32 4294901760, %v107_v14  ;;  %v1911_v27 = vsub.f32 %v54_v10, %v1899_v19  ;;  %v1914_v28 = vsub.f32 %v52_v11, %v1901_v20  ;;  %v1993_v2 = vld [vmem:[%s2203_s3 + $0x8] sm:$0xff]  ;;  %s1635_s24 = sld [smem:[#allocation4 + $0x1]]  ;;  %s1796_s25 = smov 64  }
   0xe   :  { %v1907_v23 = vsub.f32 %v57_v9, %v1893_v16  ;;  %v114_v25 = vand.u32 4294901760, %v113_v15  ;;  %174 = vmatpush.msra.mxu3 %v1866_v4  ;;  %v120_v26 = vand.u32 4294901760, %v119_v18  ;;  %v1916_v29 = vand.u32 4294901760, %v48_v17  ;;  %s1584_s15 = sshll.u32 %s2207_s7, 4  ;;  %s1606_s18 = sshll.u32 %s2209_s9, 4  ;;  %s1585_s15 = int_to_ptr.hbm [resolvable:$true] %s1584_s15  ;;  %s1607_s18 = int_to_ptr.hbm [resolvable:$true] %s1606_s18 }
   0xf   :  { %76 = vmatpush.msra.mxu0 %v1868_v5  ;;  %146 = vmatpush.msra.mxu2 %v107_v14  ;;  %v103_v30 = vsub.f32 %v101_v13, %v102_v22  ;;  %v109_v32 = vsub.f32 %v107_v14, %v108_v24  ;;  %v287_v34 = vand.u32 4294901760, %v1911_v27  ;;  %v293_v35 = vand.u32 4294901760, %v1914_v28  ;;  %s1798_s0 = smov [#allocation11]   ;;  %s1799_s19 = smov 96  }
  0x10   :  { %v1920_v31 = vand.u32 4294901760, %v1907_v23  ;;  %v115_v33 = vsub.f32 %v113_v15, %v114_v25  ;;  %176 = vmatpush.msra.mxu3 %v1868_v5  ;;  %v1926_v36 = vsub.f32 %v50_v12, %v1903_v21  ;;  %v121_v40 = vsub.f32 %v119_v18, %v120_v26  ;;  %s1604_s3 = sshll.u32 %s1798_s0, 4  ;;  %s1800_s7 = smov [#allocation7]   ;;  %s1605_s3 = int_to_ptr.vmem [resolvable:$true] %s1604_s3 }
  0x11   :  { %78 = vmatpush.msra.mxu0 %v1876_v8  ;;  %v104_v37 = vand.u32 4294901760, %v103_v30  ;;  %149 = vmatpush.msra.mxu2 %v113_v15  ;;  %v110_v39 = vand.u32 4294901760, %v109_v32  ;;  %v288_v41 = vsub.f32 %v1911_v27, %v287_v34  ;;  %v294_v45 = vsub.f32 %v1914_v28, %v293_v35  ;;  %s1571_s20 = sshll.u32 %s1800_s7, 4  ;;  %s1801_s9 = smov [#allocation10]   ;;  %s1572_s20 = int_to_ptr.vmem [resolvable:$true] %s1571_s20 }
  0x12   :  { %v82_v38 = vsub.f32 %v1907_v23, %v1920_v31  ;;  %178 = vmatpush.msra.mxu3 %v1876_v8  ;;  %v299_v42 = vand.u32 4294901760, %v1926_v36  ;;  %v116_v44 = vand.u32 4294901760, %v115_v33  ;;  %v1940_v46 = vsub.f32 %v48_v17, %v1916_v29  ;;  %s1630_s27 = scalar_lea.vmem %s2205_s5, %s1062_s23  ;;  %s1795_s23 = smov 32  }
  0x13   :  { %201 = vmatpush.msrb.mxu0 %v102_v22  ;;  %105 = vmatpush.msra.mxu1 %v104_v37  ;;  %v289_v47 = vand.u32 4294901760, %v288_v41  ;;  %v122_v48 = vand.u32 4294901760, %v121_v40  ;;  %v295_v52 = vand.u32 4294901760, %v294_v45  ;;  %v436_v56 = vsel %vm55_vm0, %v1952_v51, 0  ;;  %s1632_s29 = scalar_lea.vmem %s2205_s5, %s1635_s24  ;;  %s1593_s24 = sshll.u32 %s1801_s9, 4  ;;  %s1594_s24 = int_to_ptr.vmem [resolvable:$true] %s1593_s24 }
  0x14   :  { %v83_v43 = vand.u32 4294901760, %v82_v38  ;;  %152 = vmatpush.msra.mxu2 %v119_v18  ;;  %v305_v49 = vand.u32 4294901760, %v1940_v46  ;;  %182 = vmatmul.f32.vlgmr.msra.gmra.mxu3 %v1920_v31  ;;  %v300_v50 = vsub.f32 %v1926_v36, %v299_v42  ;;  %v1968_v58 = vand.u32 4294901760, %v432_v53  ;;  %s1595_s26 = sshll.u32 %s2208_s8, 4  ;;  %s1596_s26 = int_to_ptr.hbm [resolvable:$true] %s1595_s26 }
  0x15   :  { %155 = vmatmul.f32.vlgmr.msra.gmra.mxu2 %v1907_v23  ;;  %205 = vmatpush.msrb.mxu0 %v108_v24  ;;  %v1976_v61 = vand.u32 4294901760, %v431_v55  ;;  %v1978_v62 = vand.u32 4294901760, %v436_v56  ;;  %v1988_v1 = vand.u32 4294901760, %v430_v59  ;;  %vm834_vm3 = vcmask 123904  }
  0x16   :  { %84 = vmatmul.f32.vlgmr.msra.gmra.mxu0 %v83_v43  ;;  %111 = vmatpush.msra.mxu1 %v110_v39  ;;  %v306_v54 = vsub.f32 %v1940_v46, %v305_v49  ;;  %v301_v57 = vand.u32 4294901760, %v300_v50  ;;  %v1986_v0 = vsub.f32 %v432_v53, %v1968_v58  ;;  %vm899_vm12 = vcmask 130048  }
  0x17   :  { %257 = vmatpush.msrb.mxu2 %v1899_v19  ;;  %209 = vmatpush.msrb.mxu0 %v114_v25  ;;  %v462_v6 = vsub.f32 %v436_v56, %v1978_v62  ;;  %v503_v9 = vsub.f32 %v430_v59, %v1988_v1  ;;  %vm1067_vm13 = vcmask 122880   ;;  %vm1080_vm14 = vcmask 386176  }
  0x18   :  { %117 = vmatpush.msra.mxu1 %v116_v44  ;;  %290 = vmatpush.msrb.mxu3 %v289_v47  ;;  %v307_v60 = vand.u32 4294901760, %v306_v54  ;;  %v492_v7 = vand.u32 4294901760, %v1986_v0  ;;  %vm1090_vm15 = vcmask 392192  }
  0x19   :  { %259 = vmatpush.msrb.mxu2 %v1901_v20  ;;  %213 = vmatpush.msrb.mxu0 %v120_v26  ;;  %v504_v14 = vand.u32 4294901760, %v503_v9 }
  0x1a   :  { %123 = vmatpush.msra.mxu1 %v122_v48  ;;  %296 = vmatpush.msrb.mxu3 %v295_v52  ;;  %v493_v13 = vsub.f32 %v1986_v0, %v492_v7 }
  0x1b   :  { %125 = vmatmul.f32.vlgmr.msra.gmra.mxu1 %v1893_v16  ;;  %261 = vmatpush.msrb.mxu2 %v1903_v21  ;;  %v505_v22 = vsub.f32 %v503_v9, %v504_v14 }
  0x1c   :  { %232 = vmatpush.msrb.mxu1 %v1864_v3  ;;  %328 = vmatpush.msra.mxu0 %v1911_v27  ;;  %v2000_v3 = vsub.f32 %v431_v55, %v1976_v61 }
  0x1d   :  { %263 = vmatpush.msrb.mxu2 %v1916_v29  ;;  %302 = vmatpush.msrb.mxu3 %v301_v57  ;;  %v506_v26 = vand.u32 4294901760, %v505_v22 }
  0x1e   :  { %215 = vmatmul.f32.vlgmr.msrb.gmra.mxu0 %v1893_v16  ;;  %234 = vmatpush.msrb.mxu1 %v1866_v4  ;;  %v2002_v4 = vand.u32 4294901760, %v429_v63  ;;  %v498_v10 = vand.u32 4294901760, %v2000_v3 }
  0x1f   :  { %269 = vmatmul.f32.vlgmr.msrb.gmra.mxu2 %v83_v43  ;;  %331 = vmatpush.msra.mxu0 %v1914_v28 }
  0x20   :  { %236 = vmatpush.msrb.mxu1 %v1868_v5  ;;  %308 = vmatpush.msrb.mxu3 %v307_v60  ;;  %v439_v5 = vsel %vm55_vm0, %v1993_v2, 0  ;;  %v509_v11 = vsub.f32 %v429_v63, %v2002_v4  ;;  %v499_v17 = vsub.f32 %v2000_v3, %v498_v10 }
  0x21   :  { %386 = vmatpush.msra.mxu2 %v287_v34  ;;  %310 = vmatmul.f32.vlgmr.msrb.gmra.mxu3 %v1893_v16  ;;  %v2020_v12 = vand.u32 4294901760, %v439_v5 }
  0x22   :  { %238 = vmatpush.msrb.mxu1 %v1876_v8  ;;  %334 = vmatpush.msra.mxu0 %v1926_v36  ;;  %v463_v8 = vand.u32 4294901760, %v462_v6  ;;  %v510_v18 = vand.u32 4294901760, %v509_v11  ;;  %v500_v24 = vand.u32 4294901760, %v499_v17 }
  0x23   :  { %390 = vmatpush.msra.mxu2 %v293_v35  ;;  %417 = vmatpush.msra.mxu3 %v1899_v19 }
  0x24   :  { %240 = vmatmul.f32.vlgmr.msrb.gmra.mxu1 %v1893_v16  ;;  %337 = vmatpush.msra.mxu0 %v1940_v46  ;;  %v464_v15 = vsub.f32 %v462_v6, %v463_v8  ;;  %v511_v25 = vsub.f32 %v509_v11, %v510_v18 }
  0x25   :  { %357 = vmatpush.msra.mxu1 %v1899_v19  ;;  %394 = vmatpush.msra.mxu2 %v299_v42  ;;  %v470_v19 = vsub.f32 %v439_v5, %v2020_v12  ;;  %v1649_v5 = vld [vmem:[%s2205_s5 + $0x20] ss:$0 sm:$0xff] }
  0x26   :  { %419 = vmatpush.msra.mxu3 %v1901_v20  ;;  %340 = vmatmul.f32.vlgmr.msra.gmra.mxu0 %v1907_v23  ;;  %v465_v23 = vand.u32 4294901760, %v464_v15 }
  0x27   :  { %359 = vmatpush.msra.mxu1 %v1901_v20  ;;  %398 = vmatpush.msra.mxu2 %v305_v49  ;;  %v494_v20 = vand.u32 4294901760, %v493_v13 }
  0x28   :  { %421 = vmatpush.msra.mxu3 %v1903_v21  ;;  %454 = vmatpush.msrb.mxu0 %v1968_v58 }
  0x29   :  { %400 = vmatmul.f32.vlgmr.msra.gmra.mxu2 %v1893_v16  ;;  %361 = vmatpush.msra.mxu1 %v1903_v21  ;;  %v471_v21 = vand.u32 4294901760, %v470_v19 }
  0x2a   :  { %423 = vmatpush.msra.mxu3 %v1916_v29  ;;  %456 = vmatpush.msrb.mxu0 %v1976_v61 }
  0x2b   :  { %537 = vmatpush.msrb.mxu2 %v1986_v0  ;;  %425 = vmatmul.f32.vlgmr.msra.gmra.mxu3 %v1893_v16  ;;  %v512_v16 = vand.u32 4294901760, %v511_v25  ;;  %v472_v27 = vsub.f32 %v470_v19, %v471_v21 }
  0x2c   :  { %363 = vmatpush.msra.mxu1 %v1916_v29  ;;  %458 = vmatpush.msrb.mxu0 %v1988_v1 }
  0x2d   :  { %540 = vmatpush.msrb.mxu2 %v2000_v3  ;;  %571 = vmatpush.msrb.mxu3 %v1968_v58  ;;  %v473_v28 = vand.u32 4294901760, %v472_v27 }
  0x2e   :  { %367 = vmatmul.f32.vlgmr.msra.gmra.mxu1 %v1920_v31  ;;  %460 = vmatpush.msrb.mxu0 %v2002_v4 }
  0x2f   :  { %495 = vmatpush.msrb.mxu1 %v494_v20  ;;  %543 = vmatpush.msrb.mxu2 %v503_v9 }
  0x30   :  { %573 = vmatpush.msrb.mxu3 %v1976_v61  ;;  %466 = vmatmul.f32.vlgmr.msrb.gmra.mxu0 %v465_v23 }
  0x31   :  { %501 = vmatpush.msrb.mxu1 %v500_v24  ;;  %546 = vmatpush.msrb.mxu2 %v509_v11 }
  0x32   :  { %575 = vmatpush.msrb.mxu3 %v1988_v1  ;;  %549 = vmatmul.f32.vlgmr.msrb.gmra.mxu2 %v462_v6 }
  0x33   :  { %507 = vmatpush.msrb.mxu1 %v506_v26  ;;  %606 = vmatpush.msra.mxu0 %v492_v7 }
  0x34   :  { %577 = vmatpush.msrb.mxu3 %v2002_v4 }
  0x35   :  { %581 = vmatmul.f32.vlgmr.msrb.gmra.mxu3 %v463_v8  ;;  %513 = vmatpush.msrb.mxu1 %v512_v16 }
  0x36   :  { %515 = vmatmul.f32.vlgmr.msrb.gmra.mxu1 %v1978_v62  ;;  %610 = vmatpush.msra.mxu0 %v498_v10 }
  0x37   :  { %641 = vmatpush.msra.mxu1 %v1968_v58 }
  0x38   :  { %614 = vmatpush.msra.mxu0 %v504_v14 }
  0x39   :  { %474 = vmatmul.f32.gmra.mxu0 %v473_v28  ;;  %643 = vmatpush.msra.mxu1 %v1976_v61 }
  0x3a   :  { %618 = vmatpush.msra.mxu0 %v510_v18  ;;  %554 = vmatmul.f32.gmra.mxu2 %v470_v19 }
  0x3b   :  { %645 = vmatpush.msra.mxu1 %v1988_v1 }
  0x3d   :  { %587 = vmatmul.f32.gmra.mxu3 %v471_v21  ;;  %647 = vmatpush.msra.mxu1 %v2002_v4 }
  0x3e   :  { %519 = vmatmul.f32.gmra.mxu1 %v2020_v12 }
  0x41   :  { %620 = vmatmul.f32.vlgmr.msra.gmra.mxu0 %v1978_v62 }
  0x46   :  { %649 = vmatmul.f32.vlgmr.msra.gmra.mxu1 %v1978_v62 }
  0x49   :  { %624 = vmatmul.f32.gmra.mxu0 %v2020_v12 }
  0x4e   :  { %653 = vmatmul.f32.gmra.mxu1 %v2020_v12  ;;  %v434_v12 = vld [vmem:[%s2205_s5 + $0x28] sm:$0x1] }
  0x4f   :  { %v667_v18 = vsel %vm55_vm0, %v434_v12, 0 }
  0x50   :  { %v693_v20 = vand.u32 4294901760, %v667_v18 }
  0x52   :  { %v694_v25 = vsub.f32 %v667_v18, %v693_v20  ;;  %v919_v18 = vand.u32 4294901760, %v1952_v51 }
  0x54   :  { %v695_v26 = vand.u32 4294901760, %v694_v25 }
  0x93   :  { %v85_v29 = vpop.f32.mrf.mxu0 }
  0x97   :  { %v183_v33 = vpop.f32.mrf.mxu3 }
  0x98   :  { %v126_v30 = vpop.f32.mrf.mxu1  ;;  %v156_v31 = vpop.f32.mrf.mxu2 }
  0x99   :  { %v127_v32 = vadd.f32 %v126_v30, %v85_v29  ;;  %v696_v30 = vsub.f32 %v694_v25, %v695_v26 }
  0x9b   :  { %v157_v34 = vadd.f32 %v156_v31, %v127_v32  ;;  %v216_v35 = vpop.f32.mrf.mxu0 }
  0x9d   :  { %v184_v36 = vadd.f32 %v183_v33, %v157_v34  ;;  %v697_v34 = vand.u32 4294901760, %v696_v30 }
  0x9f   :  { %v217_v37 = vadd.f32 %v216_v35, %v184_v36  ;;  %v2071_v35 = vand.u32 4294901760, %v1993_v2 }
  0xa1   :  { %v241_v38 = vpop.f32.mrf.mxu1 }
  0xa2   :  { %v2059_v39 = vadd.f32 %v241_v38, %v217_v37  ;;  %v270_v40 = vpop.f32.mrf.mxu2 }
  0xa3   :  { %v341_v41 = vpop.f32.mrf.mxu0 }
  0xa4   :  { %v311_v42 = vpop.f32.mrf.mxu3 }
  0xa5   :  { %v312_v46 = vadd.f32 %v311_v42, %v270_v40  ;;  %v2076_v40 = vsub.f32 %v1993_v2, %v2071_v35 }
  0xa7   :  { %v342_v49 = vadd.f32 %v341_v41, %v312_v46 }
  0xab   :  { %v368_v43 = vpop.f32.mrf.mxu1 }
  0xac   :  { %v401_v44 = vpop.f32.mrf.mxu2  ;;  %v369_v53 = vadd.f32 %v368_v43, %v342_v49 }
  0xad   :  { %v467_v45 = vpop.f32.mrf.mxu0 }
  0xae   :  { %v426_v47 = vpop.f32.mrf.mxu3  ;;  %v402_v57 = vadd.f32 %v401_v44, %v369_v53 }
  0xb0   :  { %v427_v60 = vadd.f32 %v426_v47, %v402_v57 }
  0xb2   :  { %v657_v3 = vperm.slane %v427_v60, 0  ;;  %v662_v15 = vperm.slane %v427_v60, 1 }
  0xb3   :  { %v516_v48 = vpop.f32.mrf.mxu1 }
  0xb4   :  { %v517_v54 = vadd.f32 %v516_v48, %v467_v45 }
  0xb5   :  { %v550_v52 = vpop.f32.mrf.mxu2 }
  0xb6   :  { %v475_v50 = vpop.f32.mrf.mxu0  ;;  %v551_v58 = vadd.f32 %v550_v52, %v517_v54 }
  0xb8   :  { %v582_v55 = vpop.f32.mrf.mxu3 }
  0xb9   :  { %v583_v61 = vadd.f32 %v582_v55, %v551_v58 }
  0xbb   :  { %v520_v56 = vpop.f32.mrf.mxu1 }
  0xbc   :  { %v521_v62 = vadd.f32 %v520_v56, %v475_v50 }
  0xbd   :  { %v555_v63 = vpop.f32.mrf.mxu2 }
  0xbe   :  { %v621_v59 = vpop.f32.mrf.mxu0  ;;  %v556_v4 = vadd.f32 %v555_v63, %v521_v62 }
  0xbf   :  { %v622_v0 = vadd.f32 %v621_v59, %v583_v61 }
  0xc0   :  { %v588_v7 = vpop.f32.mrf.mxu3 }
  0xc1   :  { %v589_v10 = vadd.f32 %v588_v7, %v556_v4 }
  0xc3   :  { %v650_v1 = vpop.f32.mrf.mxu1 }
  0xc4   :  { %v651_v6 = vadd.f32 %v650_v1, %v622_v0  ;;  %v1793_v0 = vmov 0.0  }
  0xc5   :  { %835 = vst.msk [vmem:[#allocation2] sm:$0x3] %vm834_vm3, %v1793_v0 }
  0xc6   :  { %v658_v9 = vadd.f32 %v657_v3, %v651_v6  ;;  %v625_v8 = vpop.f32.mrf.mxu0 }
  0xc7   :  { %v626_v13 = vadd.f32 %v625_v8, %v589_v10 }
  0xc8   :  { %v660_v11 = vadd.f32 %v1649_v5, %v658_v9 }
  0xca   :  { %1651 = vtanh.f32 %v660_v11 }
  0xcb   :  { %v654_v14 = vpop.f32.mrf.mxu1 }
  0xcc   :  { %v655_v17 = vadd.f32 %v654_v14, %v626_v13 }
  0xce   :  { %v663_v19 = vadd.f32 %v662_v15, %v655_v17  ;;  %v946_v17 = vand.u32 4294901760, %v2076_v40 }
  0xd0   :  { %v1652_v22 = vpop.eup %1651  ;;  %v664_v23 = vadd.f32 %v1649_v5, %v663_v19  ;;  %v947_v19 = vsub.f32 %v2076_v40, %v946_v17 }
  0xd1   :  { %v670_v24 = vsel %vm55_vm0, %v1652_v22, 0 }
  0xd2   :  { %1653 = vtanh.f32 %v664_v23  ;;  %v691_v21 = vand.u32 4294901760, %v670_v24  ;;  %v948_v22 = vand.u32 4294901760, %v947_v19 }
  0xd4   :  { %v723_v29 = vsub.f32 %v670_v24, %v691_v21 }
  0xd6   :  { %v724_v33 = vand.u32 4294901760, %v723_v29 }
  0xd8   :  { %v1654_v16 = vpop.eup %1653  ;;  %v725_v38 = vsub.f32 %v723_v29, %v724_v33 }
  0xd9   :  { %v673_v27 = vsel %vm55_vm0, %v1654_v16, 0 }
  0xda   :  { %v689_v28 = vand.u32 4294901760, %v673_v27  ;;  %v726_v41 = vand.u32 4294901760, %v725_v38 }
  0xdc   :  { %690 = vmatpush.xpose.msra.mxu2 %v689_v28  ;;  %v717_v31 = vsub.f32 %v673_v27, %v689_v28  ;;  %826 = vmatpush.xpose.msrb.mxu1 %v689_v28 }
  0xde   :  { %v718_v32 = vand.u32 4294901760, %v717_v31 }
  0xe0   :  { %692 = vmatpush.xpose.msra.mxu2 %v691_v21  ;;  %801 = vmatpush.xpose.msrb.mxu0 %v718_v32  ;;  %v719_v36 = vsub.f32 %v717_v31, %v718_v32 }
  0xe1   :  { %828 = vmatpush.xpose.msrb.mxu1 %v691_v21 }
  0xe2   :  { %v720_v37 = vand.u32 4294901760, %v719_v36 }
  0xe3   :  { %698 = vmatmul.f32.vlgmr.msra.gmra.mxu2 %v697_v34 }
  0xe4   :  { %749 = vmatpush.xpose.msrb.mxu2 %v717_v31  ;;  %721 = vmatpush.xpose.msra.mxu3 %v720_v37 }
  0xe5   :  { %1002 = vmatpush.msra.mxu1 %v2071_v35  ;;  %805 = vmatpush.xpose.msrb.mxu0 %v724_v33 }
  0xe6   :  { %830 = vmatmul.f32.vlgmr.msrb.gmra.mxu1 %v693_v20 }
  0xe7   :  { %1004 = vmatpush.msra.mxu1 %v919_v18 }
  0xe8   :  { %752 = vmatpush.xpose.msrb.mxu2 %v723_v29  ;;  %807 = vmatmul.f32.vlgmr.msrb.gmra.mxu0 %v693_v20 }
  0xe9   :  { %977 = vmatpush.msra.mxu0 %v2076_v40  ;;  %727 = vmatpush.xpose.msra.mxu3 %v726_v41 }
  0xeb   :  { %755 = vmatmul.f32.vlgmr.msrb.gmra.mxu2 %v694_v25 }
  0xec   :  { %918 = vmatpush.msra.mxu2 %v2071_v35  ;;  %729 = vmatmul.f32.vlgmr.msra.gmra.mxu3 %v693_v20  ;;  %v951_v20 = vsub.f32 %v1952_v51, %v919_v18 }
  0xed   :  { %774 = vmatpush.xpose.msrb.mxu3 %v689_v28 }
  0xee   :  { %920 = vmatpush.msra.mxu2 %v919_v18  ;;  %v952_v23 = vand.u32 4294901760, %v951_v20  ;;  %980 = vmatpush.msra.mxu0 %v951_v20 }
  0xf0   :  { %1029 = vmatpush.msrb.mxu2 %v946_v17  ;;  %v953_v24 = vsub.f32 %v951_v20, %v952_v23 }
  0xf1   :  { %776 = vmatpush.xpose.msrb.mxu3 %v691_v21 }
  0xf2   :  { %1033 = vmatpush.msrb.mxu2 %v952_v23  ;;  %v954_v25 = vand.u32 4294901760, %v953_v24 }
  0xf4   :  { %780 = vmatmul.f32.vlgmr.msrb.gmra.mxu3 %v695_v26 }
  0xf5   :  { %949 = vmatpush.msra.mxu3 %v948_v22 }
  0xf7   :  { %955 = vmatpush.msra.mxu3 %v954_v25 }
  0xf9   :  { %1054 = vmatpush.msrb.mxu3 %v2071_v35 }
  0xfb   :  { %1056 = vmatpush.msrb.mxu3 %v919_v18  ;;  %v1082_v18 = vld [vmem:[%s2204_s4] sm:$0xff] }
  0xfc   :  { %v1114_v23 = vand.u32 4294901760, %v1082_v18 }
 0x163   :  { %v831_v49 = vpop.f32.mrf.mxu1 }
 0x165   :  { %v808_v47 = vpop.f32.mrf.mxu0 }
 0x166   :  { %v699_v42 = vpop.f32.mrf.mxu2 }
 0x16e   :  { %v756_v44 = vpop.f32.mrf.mxu2 }
 0x16f   :  { %v730_v43 = vpop.f32.mrf.mxu3 }
 0x170   :  { %v731_v2 = vadd.f32 %v730_v43, %v699_v42  ;;  %v1087_v43 = vld [vmem:[%s2204_s4 + $0x50] sm:$0xff] }
 0x172   :  { %v757_v45 = vadd.f32 %v756_v44, %v731_v2  ;;  %v1086_v2 = vld [vmem:[%s2204_s4 + $0x40] sm:$0xff]  ;;  %v1634_v44 = vld [vmem:[%s1630_s27 + $0x30] sm:$0x1] }
 0x177   :  { %v781_v46 = vpop.f32.mrf.mxu3 }
 0x178   :  { %v782_v48 = vadd.f32 %v781_v46, %v757_v45  ;;  %v2112_v45 = vand.u32 4294901760, %v1087_v43  ;;  %v2114_v46 = vand.u32 4294901760, %v1086_v2 }
 0x17a   :  { %v809_v50 = vadd.f32 %v808_v47, %v782_v48  ;;  %v1066_v47 = vmax.f32 %v1634_v44, 0.0  ;;  %v1636_v48 = vld [vmem:[%s1632_s29 + $0x30] sm:$0x1]  ;;  %1105 = vmatpush.msrb.mxu0 %v2112_v45 }
 0x17c   :  { %v832_v52 = vadd.f32 %v831_v49, %v809_v50  ;;  %v1073_v49 = vmax.f32 %v1636_v48, 0.0  ;;  %v2117_v50 = vsub.f32 %v1087_v43, %v2112_v45  ;;  %1068 = vst.msk [vmem:[#allocation3] sm:$0x1] %vm1067_vm13, %v1066_v47  ;;  %1107 = vmatpush.msrb.mxu0 %v2114_v46 }
 0x17e   :  { %v864_v53 = vsel %vm863_vm1, %v832_v52, -inf  ;;  %v837_v54 = vsel %vm836_vm2, %v832_v52, -inf  ;;  %1074 = vst.msk [vmem:[#allocation3 + $0x1] sm:$0x1] %vm1067_vm13, %v1073_v49 }
 0x17f   :  { %865 = vmax.xlane.f32.xlu0 %v864_v53  ;;  %v1137_v53 = vand.u32 4294901760, %v2117_v50 }
 0x187   :  { %838 = vmax.xlane.f32.xlu0 %v837_v54 }
 0x1f2   :  { %v866_v55 = vpop.xlane.xlu0 %865 }
 0x1f3   :  { %v867_v56 = vsub.f32 %v832_v52, %v866_v55  ;;  %v1138_v55 = vsub.f32 %v2117_v50, %v1137_v53 }
 0x1f5   :  { %v868_v57 = vmul.f32 1.442695, %v867_v56 }
 0x1f7   :  { %1655 = vpow2.f32 %v868_v57  ;;  %v1139_v57 = vand.u32 4294901760, %v1138_v55 }
 0x1f9   :  { %1140 = vmatpush.msrb.mxu1 %v1139_v57 }
 0x1fa   :  { %v839_v59 = vpop.xlane.xlu0 %838 }
 0x1fb   :  { %v840_v60 = vsub.f32 %v832_v52, %v839_v59  ;;  %v2120_v52 = vsub.f32 %v1086_v2, %v2114_v46 }
 0x1fd   :  { %v2082_v58 = vpop.eup %1655  ;;  %v841_v61 = vmul.f32 1.442695, %v840_v60  ;;  %v1143_v54 = vand.u32 4294901760, %v2120_v52 }
 0x1fe   :  { %871 = vrot.lane.b32.xlu1 %v2082_v58, %s1792_s22 }
 0x1ff   :  { %1657 = vpow2.f32 %v841_v61  ;;  %v1144_v56 = vsub.f32 %v2120_v52, %v1143_v54 }
 0x205   :  { %v1658_v62 = vpop.eup %1657 }
 0x206   :  { %v843_v63 = vsel %vm836_vm2, %v1658_v62, 0.0 }
 0x228   :  { %844 = vadd.xlane.f32.xlu1 %v843_v63 }
 0x270   :  { %v872_v1 = vpop.permute.xlu1 %871 }
 0x271   :  { %v874_v3 = vsel %vm836_vm2, %v872_v1, 0.0 }
 0x272   :  { %875 = vadd.xlane.f32.xlu2 %v874_v3 }
 0x29b   :  { %v845_v4 = vpop.xlane.xlu1 %844 }
 0x29c   :  { %1659 = vrcp.f32 %v845_v4  ;;  %v857_v9 = vand.u32 2147483648, %v845_v4  ;;  %v855_v10 = vand.u32 2147483647, %v845_v4  ;;  %vm851_vm5 = vweird.f32 %v845_v4 }
 0x29e   :  { %v858_v12 = vor.u32 1.1754944e-38, %v857_v9  ;;  %vm856_vm7 = vcmp.eq.f32.partialorder %v855_v10, 8.507059e+37  ;;  %v1085_v9 = vld [vmem:[%s2204_s4 + $0x30] sm:$0xff]  ;;  %v1084_v10 = vld [vmem:[%s2204_s4 + $0x20] sm:$0xff] }
 0x2a2   :  { %v1660_v6 = vpop.eup %1659 }
 0x2a3   :  { %v847_v5 = vmul.f32 %v1660_v6, %v845_v4  ;;  %vm852_vm4 = vweird.f32 %v1660_v6 }
 0x2a4   :  { %vm853_vm6 = vmor %vm851_vm5, %vm852_vm4 }
 0x2a5   :  { %v848_v7 = vsub.f32 1.0, %v847_v5 }
 0x2a7   :  { %v849_v8 = vmul.f32 %v1660_v6, %v848_v7 }
 0x2a9   :  { %v850_v11 = vadd.f32 %v1660_v6, %v849_v8  ;;  %v1108_v8 = vand.u32 4294901760, %v1085_v9 }
 0x2ab   :  { %v854_v13 = vsel %vm853_vm6, %v1660_v6, %v850_v11  ;;  %v1148_v11 = vsub.f32 %v1085_v9, %v1108_v8  ;;  %1109 = vmatpush.msrb.mxu0 %v1108_v8  ;;  %vm1351_vm6 = vcmask 254976  }
 0x2ac   :  { %v859_v14 = vsel %vm856_vm7, %v858_v12, %v854_v13  ;;  %v1110_v12 = vand.u32 4294901760, %v1084_v10  ;;  %v1083_v13 = vld [vmem:[%s2204_s4 + $0x10] sm:$0xff] }
 0x2ad   :  { %v860_v15 = vmul.f32 %v1658_v62, %v859_v14  ;;  %v1149_v14 = vand.u32 4294901760, %v1148_v11  ;;  %v1112_v17 = vand.u32 4294901760, %v1083_v13 }
 0x2ae   :  { %1111 = vmatpush.msrb.mxu0 %v1110_v12 }
 0x2af   :  { %862 = vst.msk [vmem:[#allocation2] sm:$0x1] %vm836_vm2, %v860_v15  ;;  %v1150_v19 = vsub.f32 %v1148_v11, %v1149_v14  ;;  %v1160_v22 = vsub.f32 %v1083_v13, %v1112_v17  ;;  %v1361_v13 = vld [vmem:[%s2205_s5 + $0x60] sm:$0xff] }
 0x2b0   :  { %861 = vst.msk [vmem:[#allocation11] sm:$0x1] %vm836_vm2, %v860_v15  ;;  %v1154_v15 = vsub.f32 %v1084_v10, %v1110_v12  ;;  %1113 = vmatpush.msrb.mxu0 %v1112_v17 }
 0x2b1   :  { %v1151_v24 = vand.u32 4294901760, %v1150_v19 }
 0x2b2   :  { %v1155_v20 = vand.u32 4294901760, %v1154_v15  ;;  %1115 = vmatpush.msrb.mxu0 %v1114_v23 }
 0x2b4   :  { %v1156_v25 = vsub.f32 %v1154_v15, %v1155_v20 }
 0x2e5   :  { %v876_v21 = vpop.xlane.xlu2 %875 }
 0x2e6   :  { %1661 = vrcp.f32 %v876_v21  ;;  %v888_v51 = vand.u32 2147483648, %v876_v21  ;;  %v886_v29 = vand.u32 2147483647, %v876_v21  ;;  %vm882_vm9 = vweird.f32 %v876_v21 }
 0x2e8   :  { %v889_v31 = vor.u32 1.1754944e-38, %v888_v51  ;;  %vm887_vm11 = vcmp.eq.f32.partialorder %v886_v29, 8.507059e+37 }
 0x2ec   :  { %v1662_v26 = vpop.eup %1661 }
 0x2ed   :  { %v878_v16 = vmul.f32 %v1662_v26, %v876_v21  ;;  %vm883_vm8 = vweird.f32 %v1662_v26  ;;  %v1161_v21 = vand.u32 4294901760, %v1160_v22 }
 0x2ee   :  { %vm884_vm10 = vmor %vm882_vm9, %vm883_vm8 }
 0x2ef   :  { %v879_v27 = vsub.f32 1.0, %v878_v16  ;;  %v1157_v16 = vand.u32 4294901760, %v1156_v25 }
 0x2f1   :  { %v880_v28 = vmul.f32 %v1662_v26, %v879_v27  ;;  %v1162_v27 = vsub.f32 %v1160_v22, %v1161_v21 }
 0x2f3   :  { %v881_v30 = vadd.f32 %v1662_v26, %v880_v28  ;;  %v1163_v28 = vand.u32 4294901760, %v1162_v27  ;;  %v1359_v27 = vld [vmem:[%s2205_s5 + $0x50] sm:$0xff] }
 0x2f5   :  { %v885_v32 = vsel %vm884_vm10, %v1662_v26, %v881_v30  ;;  %v1166_v26 = vsub.f32 %v1082_v18, %v1114_v23 }
 0x2f6   :  { %v890_v33 = vsel %vm887_vm11, %v889_v31, %v885_v32  ;;  %v44_v31 = vld [vmem:[%s2202_s2] sm:$0x3]  ;;  %s1573_s2 = sshll.u32 %s2206_s6, 4  ;;  %s1574_s2 = int_to_ptr.hbm [resolvable:$true] %s1573_s2 }
 0x2f7   :  { %v2096_v34 = vmul.f32 %v2082_v58, %v890_v33  ;;  %v1145_v58 = vand.u32 4294901760, %v1144_v56  ;;  %v1167_v51 = vand.u32 4294901760, %v1166_v26 }
 0x2f9   :  { %897 = vst.msk [vmem:[#allocation2 + $0x1] sm:$0x1] %vm863_vm1, %v2096_v34  ;;  %1146 = vmatpush.msrb.mxu1 %v1145_v58  ;;  %v1168_v29 = vsub.f32 %v1166_v26, %v1167_v51 }
 0x2fb   :  { %1152 = vmatpush.msrb.mxu1 %v1151_v24  ;;  %v1169_v30 = vand.u32 4294901760, %v1168_v29 }
 0x2fd   :  { %1158 = vmatpush.msrb.mxu1 %v1157_v16 }
 0x2ff   :  { %1164 = vmatpush.msrb.mxu1 %v1163_v28  ;;  %v1358_v28 = vld [vmem:[%s2205_s5 + $0x48] sm:$0xff] }
 0x300   :  { %v898_v35 = vld [vmem:[#allocation2] sm:$0x3] }
 0x301   :  { %v901_v36 = vsel %vm899_vm12, %v898_v35, 0  ;;  %1170 = vmatpush.msrb.mxu1 %v1169_v30  ;;  %v1384_v30 = vand.u32 4294901760, %v1358_v28 }
 0x302   :  { %v921_v37 = vand.u32 4294901760, %v901_v36 }
 0x304   :  { %957 = vmatmul.f32.vlgmr.msra.gmra.mxu3 %v921_v37  ;;  %v922_v38 = vsub.f32 %v901_v36, %v921_v37 }
 0x305   :  { %1221 = vmatpush.msra.mxu3 %v2112_v45 }
 0x306   :  { %983 = vmatmul.f32.vlgmr.msra.gmra.mxu0 %v922_v38  ;;  %v923_v40 = vand.u32 4294901760, %v922_v38 }
 0x307   :  { %1223 = vmatpush.msra.mxu3 %v2114_v46  ;;  %1252 = vmatpush.msra.mxu0 %v1137_v53  ;;  %v1088_v53 = vld [vmem:[%s2204_s4 + $0x60] ss:$0 sm:$0xff] }
 0x308   :  { %1008 = vmatmul.f32.vlgmr.msra.gmra.mxu1 %v923_v40  ;;  %v924_v41 = vsub.f32 %v922_v38, %v923_v40 }
 0x309   :  { %1225 = vmatpush.msra.mxu3 %v1108_v8  ;;  %1256 = vmatpush.msra.mxu0 %v1143_v54 }
 0x30a   :  { %v925_v42 = vand.u32 4294901760, %v924_v41  ;;  %1289 = vmatpush.msra.mxu1 %v2112_v45 }
 0x30b   :  { %1227 = vmatpush.msra.mxu3 %v1110_v12  ;;  %1260 = vmatpush.msra.mxu0 %v1149_v14  ;;  %v1360_v14 = vld [vmem:[%s2205_s5 + $0x58] sm:$0xff] }
 0x30c   :  { %926 = vmatmul.f32.vlgmr.msra.gmra.mxu2 %v925_v42  ;;  %1058 = vmatmul.f32.vlgmr.msrb.gmra.mxu3 %v921_v37 }
 0x30d   :  { %1188 = vmatpush.msra.mxu2 %v2117_v50  ;;  %1229 = vmatpush.msra.mxu3 %v1112_v17 }
 0x30e   :  { %1264 = vmatpush.msra.mxu0 %v1155_v20  ;;  %1291 = vmatpush.msra.mxu1 %v2114_v46 }
 0x30f   :  { %1191 = vmatpush.msra.mxu2 %v2120_v52  ;;  %1231 = vmatpush.msra.mxu3 %v1114_v23 }
 0x310   :  { %1268 = vmatpush.msra.mxu0 %v1161_v21  ;;  %1293 = vmatpush.msra.mxu1 %v1108_v8 }
 0x311   :  { %1194 = vmatpush.msra.mxu2 %v1148_v11 }
 0x312   :  { %1272 = vmatpush.msra.mxu0 %v1167_v51  ;;  %1295 = vmatpush.msra.mxu1 %v1110_v12  ;;  %v1382_v51 = vand.u32 4294901760, %v1359_v27 }
 0x313   :  { %1197 = vmatpush.msra.mxu2 %v1154_v15  ;;  %v1378_v15 = vand.u32 4294901760, %v1361_v13 }
 0x314   :  { %1035 = vmatmul.f32.vlgmr.msrb.gmra.mxu2 %v921_v37  ;;  %1297 = vmatpush.msra.mxu1 %v1112_v17  ;;  %v1380_v17 = vand.u32 4294901760, %v1360_v14  ;;  %v1420_v29 = vsub.f32 %v1359_v27, %v1382_v51 }
 0x315   :  { %1200 = vmatpush.msra.mxu2 %v1160_v22  ;;  %v1408_v18 = vsub.f32 %v1361_v13, %v1378_v15 }
 0x316   :  { %1299 = vmatpush.msra.mxu1 %v1114_v23  ;;  %v1414_v19 = vsub.f32 %v1360_v14, %v1380_v17 }
 0x317   :  { %1203 = vmatpush.msra.mxu2 %v1166_v26  ;;  %v1409_v20 = vand.u32 4294901760, %v1408_v18 }
 0x318   :  { %v1415_v22 = vand.u32 4294901760, %v1414_v19 }
 0x319   :  { %1379 = vmatpush.msrb.mxu2 %v1378_v15  ;;  %v1410_v23 = vsub.f32 %v1408_v18, %v1409_v20 }
 0x31a   :  { %v1416_v24 = vsub.f32 %v1414_v19, %v1415_v22 }
 0x31b   :  { %1381 = vmatpush.msrb.mxu2 %v1380_v17  ;;  %v1411_v25 = vand.u32 4294901760, %v1410_v23 }
 0x31c   :  { %v1417_v21 = vand.u32 4294901760, %v1416_v24 }
 0x31d   :  { %1412 = vmatpush.msrb.mxu3 %v1411_v25  ;;  %1383 = vmatpush.msrb.mxu2 %v1382_v51 }
 0x31f   :  { %1418 = vmatpush.msrb.mxu3 %v1417_v21  ;;  %1385 = vmatpush.msrb.mxu2 %v1384_v30 }
 0x383   :  { %v984_v62 = vpop.f32.mrf.mxu0 }
 0x385   :  { %v1009_v0 = vpop.f32.mrf.mxu1 }
 0x387   :  { %v958_v59 = vpop.f32.mrf.mxu3 }
 0x38f   :  { %v927_v60 = vpop.f32.mrf.mxu2  ;;  %v1059_v6 = vpop.f32.mrf.mxu3 }
 0x390   :  { %v959_v61 = vadd.f32 %v958_v59, %v927_v60 }
 0x392   :  { %v985_v63 = vadd.f32 %v984_v62, %v959_v61 }
 0x394   :  { %v1010_v1 = vadd.f32 %v1009_v0, %v985_v63 }
 0x397   :  { %v1036_v3 = vpop.f32.mrf.mxu2 }
 0x398   :  { %v1037_v4 = vadd.f32 %v1036_v3, %v1010_v1 }
 0x39a   :  { %v1060_v5 = vadd.f32 %v1059_v6, %v1037_v4 }
 0x39c   :  { %v1075_v7 = vmax.f32 %v1060_v5, 0.0 }
 0x39e   :  { %1077 = vrot.lane.b32.xlu2 %v1075_v7, %s1794_s13 }
 0x3a6   :  { %1327 = vrot.lane.b32.xlu2 %v44_v31, %s1795_s23  ;;  %v1421_v31 = vand.u32 4294901760, %v1420_v29 }
 0x3f8   :  { %v1078_v32 = vpop.permute.xlu2 %1077 }
 0x3f9   :  { %1081 = vst.msk [vmem:[#allocation3] sm:$0x3] %vm1080_vm14, %v1078_v32  ;;  %v1426_v32 = vsub.f32 %v1358_v28, %v1384_v30 }
 0x400   :  { %v1089_v33 = vld [vmem:[#allocation3] sm:$0x3]  ;;  %v1328_v9 = vpop.permute.xlu2 %1327 }
 0x401   :  { %v1092_v35 = vsel %vm1090_vm15, %v1089_v33, 0  ;;  %v1422_v33 = vsub.f32 %v1420_v29, %v1421_v31 }
 0x402   :  { %v1116_v36 = vand.u32 4294901760, %v1092_v35 }
 0x404   :  { %1172 = vmatmul.f32.vlgmr.msrb.gmra.mxu1 %v1116_v36  ;;  %v1117_v37 = vsub.f32 %v1092_v35, %v1116_v36  ;;  %v1423_v35 = vand.u32 4294901760, %v1422_v33 }
 0x405   :  { %1539 = vmatpush.msrb.mxu1 %v1378_v15 }
 0x406   :  { %1206 = vmatmul.f32.vlgmr.msra.gmra.mxu2 %v1117_v37  ;;  %v1118_v38 = vand.u32 4294901760, %v1117_v37  ;;  %1424 = vmatpush.msrb.mxu3 %v1423_v35 }
 0x407   :  { %1541 = vmatpush.msrb.mxu1 %v1380_v17  ;;  %1450 = vmatpush.msra.mxu2 %v1408_v18 }
 0x408   :  { %1235 = vmatmul.f32.vlgmr.msra.gmra.mxu3 %v1118_v38  ;;  %v1119_v40 = vsub.f32 %v1117_v37, %v1118_v38 }
 0x409   :  { %1543 = vmatpush.msrb.mxu1 %v1382_v51  ;;  %1453 = vmatpush.msra.mxu2 %v1414_v19 }
 0x40a   :  { %v1120_v41 = vand.u32 4294901760, %v1119_v40 }
 0x40b   :  { %1545 = vmatpush.msrb.mxu1 %v1384_v30  ;;  %1456 = vmatpush.msra.mxu2 %v1420_v29 }
 0x40c   :  { %1121 = vmatmul.f32.vlgmr.msrb.gmra.mxu0 %v1120_v41  ;;  %1301 = vmatmul.f32.vlgmr.msra.gmra.mxu1 %v1116_v36 }
 0x40d   :  { %1508 = vmatpush.msrb.mxu0 %v1409_v20  ;;  %1459 = vmatpush.msra.mxu2 %v1426_v32 }
 0x40f   :  { %1512 = vmatpush.msrb.mxu0 %v1415_v22 }
 0x411   :  { %1516 = vmatpush.msrb.mxu0 %v1421_v31 }
 0x414   :  { %1274 = vmatmul.f32.vlgmr.msra.gmra.mxu0 %v1116_v36 }
 0x481   :  { %v1173_v42 = vpop.f32.mrf.mxu1 }
 0x489   :  { %v1122_v43 = vpop.f32.mrf.mxu0  ;;  %v1207_v45 = vpop.f32.mrf.mxu2 }
 0x48a   :  { %v1123_v2 = vadd.f32 %v1122_v43, %v2059_v39  ;;  %v1302_v52 = vpop.f32.mrf.mxu1 }
 0x48b   :  { %v1236_v47 = vpop.f32.mrf.mxu3 }
 0x48c   :  { %v1174_v44 = vadd.f32 %v1173_v42, %v1123_v2 }
 0x48e   :  { %v1208_v46 = vadd.f32 %v1207_v45, %v1174_v44 }
 0x490   :  { %v1237_v48 = vadd.f32 %v1236_v47, %v1208_v46  ;;  %v1650_v46 = vld [vmem:[%s2205_s5 + $0x68] ss:$0 sm:$0xff]  ;;  %s1797_s5 = smov [#allocation8]  }
 0x491   :  { %v1275_v49 = vpop.f32.mrf.mxu0  ;;  %s1582_s12 = sshll.u32 %s1797_s5, 4  ;;  %s1583_s12 = int_to_ptr.vmem [resolvable:$true] %s1582_s12 }
 0x492   :  { %v1276_v50 = vadd.f32 %v1275_v49, %v1237_v48 }
 0x494   :  { %v1303_v54 = vadd.f32 %v1302_v52, %v1276_v50 }
 0x496   :  { %v1305_v55 = vadd.f32 %v1303_v54, %v1088_v53 }
 0x498   :  { %1663 = vtanh.f32 %v1305_v55  ;;  %v1637_v57 = vmul.f32 -1.442695, %v1305_v55 }
 0x49a   :  { %1665 = vpow2.f32 %v1637_v57 }
 0x49e   :  { %v1664_v56 = vpop.eup %1663 }
 0x49f   :  { %1332 = vrot.lane.b32.xlu0 %v1664_v56, %s1796_s25 }
 0x4a0   :  { %v1666_v39 = vpop.eup %1665 }
 0x4a1   :  { %v1309_v58 = vadd.f32 1.0, %v1666_v39 }
 0x4a3   :  { %1667 = vrcp.f32 %v1309_v58  ;;  %v1321_v0 = vand.u32 2147483648, %v1309_v58  ;;  %vm1315_vm3 = vweird.f32 %v1309_v58  ;;  %v1319_v1 = vand.u32 2147483647, %v1309_v58 }
 0x4a5   :  { %v1322_v4 = vor.u32 1.1754944e-38, %v1321_v0  ;;  %vm1320_vm5 = vcmp.eq.f32.partialorder %v1319_v1, 8.507059e+37 }
 0x4a9   :  { %v1668_v59 = vpop.eup %1667 }
 0x4aa   :  { %v1311_v60 = vmul.f32 %v1668_v59, %v1309_v58  ;;  %vm1316_vm1 = vweird.f32 %v1668_v59 }
 0x4ab   :  { %vm1317_vm4 = vmor %vm1315_vm3, %vm1316_vm1 }
 0x4ac   :  { %v1312_v61 = vsub.f32 1.0, %v1311_v60 }
 0x4ae   :  { %v1313_v62 = vmul.f32 %v1668_v59, %v1312_v61 }
 0x4b0   :  { %v1314_v63 = vadd.f32 %v1668_v59, %v1313_v62 }
 0x4b2   :  { %v1318_v3 = vsel %vm1317_vm4, %v1668_v59, %v1314_v63 }
 0x4b3   :  { %v1323_v6 = vsel %vm1320_vm5, %v1322_v4, %v1318_v3 }
 0x4b4   :  { %v1330_v8 = vmul.f32 %v1328_v9, %v1323_v6 }
 0x511   :  { %v1333_v5 = vpop.permute.xlu0 %1332 }
 0x512   :  { %v1335_v7 = vmul.f32 %v1333_v5, %v1323_v6 }
 0x514   :  { %1337 = vrot.lane.b32.xlu0 %v1335_v7, %s1795_s23 }
 0x586   :  { %v1338_v10 = vpop.permute.xlu0 %1337 }
 0x587   :  { %v2159_v11 = vadd.f32 %v1338_v10, %v1330_v8 }
 0x589   :  { %1669 = vtanh.f32 %v2159_v11 }
 0x58f   :  { %v1670_v12 = vpop.eup %1669 }
 0x590   :  { %1343 = vrot.lane.b32.xlu2 %v1670_v12, %s1796_s25 }
 0x5ea   :  { %v1344_v26 = vpop.permute.xlu2 %1343 }
 0x5eb   :  { %v1346_v16 = vmul.f32 %v1344_v26, %v1323_v6 }
 0x5ed   :  { %1354 = vrot.lane.b32.xlu0 %v1346_v16, %s1795_s23 }
 0x5f5   :  { %893 = vrot.lane.b32.xlu0 %v2096_v34, %s1792_s22  ;;  %v1427_v34 = vand.u32 4294901760, %v1426_v32 }
 0x5f7   :  { %v1428_v36 = vsub.f32 %v1426_v32, %v1427_v34  ;;  %1520 = vmatpush.msrb.mxu0 %v1427_v34 }
 0x5f9   :  { %v1429_v37 = vand.u32 4294901760, %v1428_v36 }
 0x5fb   :  { %1430 = vmatpush.msrb.mxu3 %v1429_v37 }
 0x5fd   :  { %1479 = vmatpush.msra.mxu3 %v1378_v15 }
 0x5ff   :  { %1481 = vmatpush.msra.mxu3 %v1380_v17 }
 0x601   :  { %1483 = vmatpush.msra.mxu3 %v1382_v51 }
 0x603   :  { %1485 = vmatpush.msra.mxu3 %v1384_v30 }
 0x65f   :  { %v1355_v38 = vpop.permute.xlu0 %1354 }
 0x660   :  { %v1364_v40 = vsel %vm55_vm0, %v1355_v38, 0  ;;  %1357 = vst.msk [vmem:[#allocation8] sm:$0x3] %vm1351_vm6, %v1355_v38  ;;  %vm1551_vm0 = vcmask 156672  }
 0x661   :  { %v1386_v41 = vand.u32 4294901760, %v1364_v40  ;;  %1587 = dma.vmem_to_hbm [thread:$0]  %s1583_s12, 32, %s1585_s15, [#allocation9]  }
 0x663   :  { %v1387_v42 = vsub.f32 %v1364_v40, %v1386_v41  ;;  %1432 = vmatmul.f32.vlgmr.msrb.gmra.mxu3 %v1386_v41  ;;  %1522 = vmatmul.f32.vlgmr.msrb.gmra.mxu0 %v1386_v41 }
 0x664   :  { %1547 = vmatmul.f32.vlgmr.msrb.gmra.mxu1 %v1386_v41 }
 0x665   :  { %v1388_v43 = vand.u32 4294901760, %v1387_v42 }
 0x667   :  { %v1389_v2 = vsub.f32 %v1387_v42, %v1388_v43  ;;  %v894_v44 = vpop.permute.xlu0 %893 }
 0x668   :  { %896 = vst.msk [vmem:[#allocation11 + $0x1] sm:$0x1] %vm836_vm2, %v894_v44 }
 0x669   :  { %v1390_v45 = vand.u32 4294901760, %v1389_v2  ;;  %1609 = dma.vmem_to_hbm [thread:$0]  %s1605_s3, 32, %s1607_s18, [#allocation12]  }
 0x66b   :  { %1391 = vmatmul.f32.vlgmr.msrb.gmra.mxu2 %v1390_v45  ;;  %1489 = vmatmul.f32.vlgmr.msra.gmra.mxu3 %v1388_v43 }
 0x673   :  { %1462 = vmatmul.f32.vlgmr.msra.gmra.mxu2 %v1387_v42 }
 0x6e0   :  { %v1523_v56 = vpop.f32.mrf.mxu0 }
 0x6e1   :  { %v1548_v39 = vpop.f32.mrf.mxu1 }
 0x6e6   :  { %v1433_v47 = vpop.f32.mrf.mxu3 }
 0x6ee   :  { %v1392_v48 = vpop.f32.mrf.mxu2  ;;  %v1490_v54 = vpop.f32.mrf.mxu3 }
 0x6ef   :  { %v1393_v49 = vadd.f32 %v1650_v46, %v1392_v48 }
 0x6f1   :  { %v1434_v50 = vadd.f32 %v1433_v47, %v1393_v49 }
 0x6f6   :  { %v1463_v52 = vpop.f32.mrf.mxu2 }
 0x6f7   :  { %v1464_v53 = vadd.f32 %v1463_v52, %v1434_v50 }
 0x6f9   :  { %v1491_v55 = vadd.f32 %v1490_v54, %v1464_v53 }
 0x6fb   :  { %v1524_v57 = vadd.f32 %v1523_v56, %v1491_v55 }
 0x6fd   :  { %v1549_v58 = vadd.f32 %v1548_v39, %v1524_v57 }
 0x6ff   :  { %v1552_v59 = vsel %vm1551_vm0, %v1549_v58, -inf }
 0x700   :  { %1553 = vmax.xlane.f32.xlu2 %v1552_v59 }
 0x773   :  { %v1554_v60 = vpop.xlane.xlu2 %1553 }
 0x774   :  { %v1555_v61 = vsub.f32 %v1549_v58, %v1554_v60 }
 0x776   :  { %v1556_v62 = vmul.f32 1.442695, %v1555_v61 }
 0x778   :  { %1671 = vpow2.f32 %v1556_v62 }
 0x77e   :  { %v1672_v63 = vpop.eup %1671 }
 0x77f   :  { %v1558_v0 = vsel %vm1551_vm0, %v1672_v63, 0.0 }
 0x780   :  { %1559 = vadd.xlane.f32.xlu1 %v1558_v0 }
 0x799   :  { %1348 = vrot.lane.b32.xlu1 %v2159_v11, %s1799_s19 }
 0x7f3   :  { %v1560_v1 = vpop.xlane.xlu1 %1559 }
 0x7f4   :  { %1673 = vlog2.f32 %v1560_v1 }
 0x7fa   :  { %v1674_v3 = vpop.eup %1673 }
 0x7fb   :  { %v1562_v4 = vmul.f32 0.6931472, %v1674_v3 }
 0x7fd   :  { %v1563_v6 = vadd.f32 %v1562_v4, %v1554_v60 }
 0x7ff   :  { %v1564_v5 = vsub.f32 %v1549_v58, %v1563_v6 }
 0x801   :  { %1565 = vst.msk [vmem:[#allocation7] sm:$0x3] %vm1551_vm0, %v1564_v5 }
 0x802   :  { %1576 = dma.vmem_to_hbm [thread:$0]  %s1572_s20, 32, %s1574_s2, [#allocation5]  }
 0x80b   :  { %v1349_v7 = vpop.permute.xlu1 %1348 }
 0x80c   :  { %1352 = vst.msk [vmem:[#allocation10] sm:$0x3] %vm1351_vm6, %v1349_v7 }
 0x80d   :  { %1598 = dma.vmem_to_hbm [thread:$0]  %s1594_s24, 32, %s1596_s26, [#allocation9]  }
 0x80e   :  { %1785 = dma.done.wait [#allocation5], 32  }
 0x80f   :  { %1786 = vsyncadd [#allocation5], 4294967264 }
 0x810   :  { %1787 = dma.done.wait [#allocation9], 64  }
 0x811   :  { %1788 = vsyncadd [#allocation9], 4294967232 }
 0x812   :  { %1789 = dma.done.wait [#allocation12], 32  }
 0x813   :  { %1790 = vsyncadd [#allocation12], 4294967264 }
 0x814   :  { %1626 = vsyncpa [#allocation5], 1 }
 0x815   :  { %1627 = vsyncpa [#allocation9], 1 }
 0x816   :  { %1628 = vsyncpa [#allocation12], 1 }
 0x817   :  { %1629 = vsyncpa [#allocation6], 1 }

</bundles_post_ra>
